<compile_context>
chip_gen: v7x
topology: tpu7x:2x2x1
jax: 0.10.0
libtpu: 0.0.40
codegen_flags: <defaults>
</compile_context>

<pallas_src>
import functools

import jax
import jax.numpy as jnp
from jax.experimental import pallas as pl
from jax.experimental.pallas import tpu as pltpu


# ----------------------------------------------------------------------------
# Kernel: copy one row-tile, slicing the time axis by a static offset (chomp).
# ----------------------------------------------------------------------------
def _chomp_kernel(x_ref, o_ref, *, start, t_out):
    # x_ref : [row_tile, T_padded]
    # o_ref : [row_tile, T_out]
    o_ref[...] = x_ref[:, start:start + t_out]


def _choose_row_tile(rows, t_pad, itemsize):
    """Pick a row tile: ~1 MiB input block, multiple of 8 sublanes."""
    target_rows = max(8, (1 << 20) // max(1, t_pad * itemsize))
    tile = min(rows, target_rows)
    if rows >= 8:
        tile = max(8, (tile // 8) * 8)   # multiple of 8 (sublane constraint)
    else:
        tile = rows                      # block == full dim is always legal
    return tile


# ----------------------------------------------------------------------------
# Wrapper: Chomp2d.forward
# ----------------------------------------------------------------------------
def chomp2d(x, chomp_size, conv_type="conv"):
    """x: [B, N, F, T_padded] -> [B, N, F, T_padded - chomp_size]."""
    assert chomp_size >= 1, "chomp_size must be >= 1"
    assert conv_type in ("conv", "deconv")
    B, N, F, Tp = x.shape
    t_out = Tp - chomp_size
    assert t_out >= 1
    start = 0 if conv_type == "conv" else chomp_size

    rows = B * N * F
    x2 = x.reshape(rows, Tp)  # contiguous reshape: no data movement

    itemsize = jnp.dtype(x.dtype).itemsize
    row_tile = _choose_row_tile(rows, Tp, itemsize)
    grid = (pl.cdiv(rows, row_tile),)

    kern = functools.partial(_chomp_kernel, start=start, t_out=t_out)
    out2 = pl.pallas_call(
        kern,
        out_shape=jax.ShapeDtypeStruct((rows, t_out), x.dtype),
        grid=grid,
        in_specs=[pl.BlockSpec((row_tile, Tp), lambda i: (i, 0))],
        out_specs=pl.BlockSpec((row_tile, t_out), lambda i: (i, 0)),
        compiler_params=pltpu.CompilerParams(
            dimension_semantics=("parallel",)),
    )(x2)
    return out2.reshape(B, N, F, t_out)


# ----------------------------------------------------------------------------
# Demo / correctness check
# ----------------------------------------------------------------------------
if __name__ == "__main__":
    key = jax.random.PRNGKey(0)
    # (shape [B, N, F, T_padded], chomp_size)
    cases = [
        ((2, 4, 16, 16), 3),    # small sanity case, single-block grid
        ((2, 8, 64, 200), 1),   # typical semi-causal deconv chomp (kt - 1)
        ((4, 16, 32, 160), 2),  # multi-block grid (incl. ragged last tile)
    ]
    keys = jax.random.split(key, len(cases))

    for (shape, chomp), k in zip(cases, keys):
        x = jax.random.normal(k, shape, jnp.float32)

        y_conv = chomp2d(x, chomp, conv_type="conv")
        y_deconv = chomp2d(x, chomp, conv_type="deconv")
        jax.block_until_ready((y_conv, y_deconv))

        # pure-JAX references (exact copies, so exact equality is required)
        ref_conv = x[:, :, :, :-chomp]
        ref_deconv = x[:, :, :, chomp:]
        assert y_conv.shape == ref_conv.shape
        assert y_deconv.shape == ref_deconv.shape
        assert bool(jnp.array_equal(y_conv, ref_conv))
        assert bool(jnp.array_equal(y_deconv, ref_deconv))

    print("KERNEL_OK")
</pallas_src>

<mosaic_0001>
module attributes {stable_mosaic.version = 11 : i64} {
  func.func @_chomp_kernel(%arg0: i32, %arg1: memref<128x16xf32, #tpu.memory_space<vmem>>, %arg2: memref<128x13xf32, #tpu.memory_space<vmem>>) attributes {dimension_semantics = [#tpu.dimension_semantics<parallel>], iteration_bounds = array<i64: 1>, scalar_prefetch = 0 : i64, scratch_operands = 0 : i64, tpu.core_type = #tpu.core_type<tc>, window_params = [{transform_indices = @transform_0, window_bounds = array<i64: 128, 16>}, {transform_indices = @transform_1, window_bounds = array<i64: 128, 13>}]} {
    %c0 = arith.constant 0 : index
    %c0_0 = arith.constant 0 : index
    %0 = vector.load %arg1[%c0, %c0_0] : memref<128x16xf32, #tpu.memory_space<vmem>>, vector<128x13xf32>
    %c0_1 = arith.constant 0 : index
    %c0_2 = arith.constant 0 : index
    %1 = vector.load %arg2[%c0_1, %c0_2] : memref<128x13xf32, #tpu.memory_space<vmem>>, vector<128x13xf32>
    tpu.vector_store %arg2[%c0_1, %c0_2], %0 {strides = array<i32>} : memref<128x13xf32, #tpu.memory_space<vmem>>, vector<128x13xf32>,
    return
  }
  func.func @transform_0(%arg0: i32) -> (i32, i32) {
    %c0_i32 = arith.constant 0 : i32
    %c0_i32_0 = arith.constant 0 : i32
    return %arg0, %c0_i32 : i32, i32
  }
  func.func @transform_1(%arg0: i32) -> (i32, i32) {
    %c0_i32 = arith.constant 0 : i32
    %c0_i32_0 = arith.constant 0 : i32
    return %arg0, %c0_i32 : i32, i32
  }
}

</mosaic_0001>

<bundles_post_ra>
// kernel: tpu_custom_call.1
= control target key start
LH: loop header
LB: loop body
LE: loop exit
PB: predicated region body
PF: predicated region fallthrough
CT: control target
= control target key end

     0   :  { %vm24_vm0 = vcmask 105472   ;;  %s167_s0 = inlined_call_operand.vmem [shape: f32[128,16], index: 0, kind: input, shape index: {}]   ;;  %s168_s1 = inlined_call_operand.vmem [shape: f32[128,13], index: 1, kind: output, shape index: {}]  }
   0x1   :  { %v8_v0 = vld [vmem:[%s167_s0] sm:$0xff]  ;;  %v9_v1 = vld [vmem:[%s167_s0 + $0x8] sm:$0xff]  ;;  %v10_v2 = vld [vmem:[%s167_s0 + $0x10] sm:$0xff] }
   0x2   :  { %25 = vst.msk [vmem:[%s168_s1] sm:$0xff] %vm24_vm0, %v8_v0  ;;  %26 = vst.msk [vmem:[%s168_s1 + $0x8] sm:$0xff] %vm24_vm0, %v9_v1  ;;  %v11_v3 = vld [vmem:[%s167_s0 + $0x18] sm:$0xff]  ;;  %v12_v4 = vld [vmem:[%s167_s0 + $0x20] sm:$0xff] }
   0x3   :  { %27 = vst.msk [vmem:[%s168_s1 + $0x10] sm:$0xff] %vm24_vm0, %v10_v2  ;;  %v13_v5 = vld [vmem:[%s167_s0 + $0x28] sm:$0xff]  ;;  %28 = vst.msk [vmem:[%s168_s1 + $0x18] sm:$0xff] %vm24_vm0, %v11_v3  ;;  %v14_v6 = vld [vmem:[%s167_s0 + $0x30] sm:$0xff] }
   0x4   :  { %29 = vst.msk [vmem:[%s168_s1 + $0x20] sm:$0xff] %vm24_vm0, %v12_v4  ;;  %30 = vst.msk [vmem:[%s168_s1 + $0x28] sm:$0xff] %vm24_vm0, %v13_v5  ;;  %v15_v7 = vld [vmem:[%s167_s0 + $0x38] sm:$0xff]  ;;  %v16_v8 = vld [vmem:[%s167_s0 + $0x40] sm:$0xff] }
   0x5   :  { %31 = vst.msk [vmem:[%s168_s1 + $0x30] sm:$0xff] %vm24_vm0, %v14_v6  ;;  %32 = vst.msk [vmem:[%s168_s1 + $0x38] sm:$0xff] %vm24_vm0, %v15_v7  ;;  %v17_v9 = vld [vmem:[%s167_s0 + $0x48] sm:$0xff]  ;;  %v18_v10 = vld [vmem:[%s167_s0 + $0x50] sm:$0xff] }
   0x6   :  { %33 = vst.msk [vmem:[%s168_s1 + $0x40] sm:$0xff] %vm24_vm0, %v16_v8  ;;  %v19_v11 = vld [vmem:[%s167_s0 + $0x58] sm:$0xff]  ;;  %34 = vst.msk [vmem:[%s168_s1 + $0x48] sm:$0xff] %vm24_vm0, %v17_v9  ;;  %v20_v12 = vld [vmem:[%s167_s0 + $0x60] sm:$0xff] }
   0x7   :  { %35 = vst.msk [vmem:[%s168_s1 + $0x50] sm:$0xff] %vm24_vm0, %v18_v10  ;;  %36 = vst.msk [vmem:[%s168_s1 + $0x58] sm:$0xff] %vm24_vm0, %v19_v11  ;;  %v21_v13 = vld [vmem:[%s167_s0 + $0x68] sm:$0xff]  ;;  %v22_v14 = vld [vmem:[%s167_s0 + $0x70] sm:$0xff] }
   0x8   :  { %37 = vst.msk [vmem:[%s168_s1 + $0x60] sm:$0xff] %vm24_vm0, %v20_v12  ;;  %38 = vst.msk [vmem:[%s168_s1 + $0x68] sm:$0xff] %vm24_vm0, %v21_v13  ;;  %v23_v15 = vld [vmem:[%s167_s0 + $0x78] sm:$0xff] }
   0x9   :  { %39 = vst.msk [vmem:[%s168_s1 + $0x70] sm:$0xff] %vm24_vm0, %v22_v14  ;;  %40 = vst.msk [vmem:[%s168_s1 + $0x78] sm:$0xff] %vm24_vm0, %v23_v15 }

</bundles_post_ra>
